<compile_context>
chip_gen: v6e
topology: v6e:2x2x1
jax: 0.10.0
libtpu: 0.0.40
codegen_flags: <defaults>
</compile_context>

<pallas_src>
import jax
import jax.numpy as jnp
from jax.experimental import pallas as pl
from jax.experimental.pallas import tpu as pltpu


EPS = 1e-5


def _round_up(a, m):
    return ((a + m - 1) // m) * m


def _bn_stats_kernel(x_ref, sum_ref, sumsq_ref):
    # x_ref: (tile_r, L) row tile; sum/sumsq: (1, L) grid-resident accumulators.
    i = pl.program_id(0)

    @pl.when(i == 0)
    def _init():
        sum_ref[...] = jnp.zeros_like(sum_ref)
        sumsq_ref[...] = jnp.zeros_like(sumsq_ref)

    x = x_ref[...].astype(jnp.float32)
    # Cross-sublane reduce; cheap and hidden under the DMA of the next tile.
    sum_ref[...] += jnp.sum(x, axis=0, keepdims=True)
    sumsq_ref[...] += jnp.sum(x * x, axis=0, keepdims=True)


def _bn_apply_kernel(x_ref, scale_ref, shift_ref, o_ref):
    # scale/shift are (1, L) grid-invariant blocks; the binary ops broadcast
    # from the (1, L) vreg directly (no per-tile broadcast materialization).
    x = x_ref[...].astype(jnp.float32)
    o_ref[...] = (x * scale_ref[...] + shift_ref[...]).astype(o_ref.dtype)


def batchnorm1d(x, gamma, beta, *, eps=EPS, max_tile_rows=2048):
    """x: (B, T, C); gamma, beta: (C,). Returns (B, T, C).

    Training-mode BatchNorm1d over channel C, reducing over all (B, T)
    positions (biased variance), then affine transform.
    """
    # TODO(synk): running_mean/running_var momentum buffer updates
    # (track_running_stats side-effect) are not materialized; the forward
    # output uses batch statistics exactly as PyTorch does in training mode.
    orig_dtype = x.dtype
    B, T, C = x.shape
    N = B * T
    x2d = x.reshape(N, C)
    itemsize = jnp.dtype(orig_dtype).itemsize
    sub_align = {4: 8, 2: 16, 1: 32}.get(itemsize, 8)

    # ---- lane-dense layout: channels (x row-groups) on the 128-wide lane axis
    if C % 128 == 0:
        k, Cp = 1, C
    elif 128 % C == 0:
        k, Cp = 128 // C, C          # fold k consecutive rows into the lanes
    else:
        k, Cp = 1, _round_up(C, 128)  # pad channels up to a multiple of 128
        x2d = jnp.pad(x2d, ((0, 0), (0, Cp - C)))
    L = k * Cp                        # lane width, always a multiple of 128

    # ---- tile the (folded) row axis; zero-pad rows so the sums stay exact
    R = pl.cdiv(N, k)                               # folded rows holding real data
    max_tile_rows = max(sub_align, (max_tile_rows // sub_align) * sub_align)
    bytes_per_row = L * itemsize
    bytes_cap = ((2 * 1024 * 1024) // bytes_per_row) // sub_align * sub_align
    tile_r = max(sub_align,
                 min(max_tile_rows, bytes_cap, _round_up(R, sub_align)))
    R_pad = _round_up(R, tile_r)
    Np = R_pad * k
    if Np != N:
        x2d = jnp.pad(x2d, ((0, Np - N), (0, 0)))   # zero rows contribute 0
    xf = x2d.reshape(R_pad, L)
    num_tiles = R_pad // tile_r

    # 2x-buffered input tile + 2x-buffered output tile + headroom, capped at
    # 32 MiB so it is valid on v7x's smaller VMEM as well as v5e/v6e.
    vmem_limit = int(min(32 << 20, max(8 << 20,
                                       6 * tile_r * L * itemsize + (2 << 20))))

    # ---------------- pass 1: per-channel sum / sum-of-squares ----------------
    sums, sumsq = pl.pallas_call(
        _bn_stats_kernel,
        out_shape=(jax.ShapeDtypeStruct((1, L), jnp.float32),
                   jax.ShapeDtypeStruct((1, L), jnp.float32)),
        grid=(num_tiles,),
        in_specs=[pl.BlockSpec((tile_r, L), lambda i: (i, 0))],
        out_specs=(pl.BlockSpec((1, L), lambda i: (0, 0)),
                   pl.BlockSpec((1, L), lambda i: (0, 0))),
        compiler_params=pltpu.CompilerParams(
            dimension_semantics=("arbitrary",),
            vmem_limit_bytes=vmem_limit),
    )(xf)

    # ------------- tiny JAX glue: fold mean/var/affine into scale & shift -----
    sum_c = sums.reshape(k, Cp)[:, :C].sum(axis=0)
    sumsq_c = sumsq.reshape(k, Cp)[:, :C].sum(axis=0)
    mean = sum_c / N
    var = jnp.maximum(sumsq_c / N - mean * mean, 0.0)   # biased batch variance
    inv_std = jax.lax.rsqrt(var + eps)
    scale = gamma.astype(jnp.float32) * inv_std
    shift = beta.astype(jnp.float32) - mean * scale
    if Cp != C:
        scale = jnp.concatenate([scale, jnp.ones((Cp - C,), jnp.float32)])
        shift = jnp.concatenate([shift, jnp.zeros((Cp - C,), jnp.float32)])
    scale_l = jnp.tile(scale, k).reshape(1, L)
    shift_l = jnp.tile(shift, k).reshape(1, L)

    # ---------------- pass 2: y = x * scale + shift (tiled, pipelined) --------
    yf = pl.pallas_call(
        _bn_apply_kernel,
        out_shape=jax.ShapeDtypeStruct((R_pad, L), orig_dtype),
        grid=(num_tiles,),
        in_specs=[pl.BlockSpec((tile_r, L), lambda i: (i, 0)),
                  pl.BlockSpec((1, L), lambda i: (0, 0)),
                  pl.BlockSpec((1, L), lambda i: (0, 0))],
        out_specs=pl.BlockSpec((tile_r, L), lambda i: (i, 0)),
        compiler_params=pltpu.CompilerParams(
            dimension_semantics=("parallel",),
            vmem_limit_bytes=vmem_limit),
    )(xf, scale_l, shift_l)

    y2d = yf.reshape(R_pad * k, Cp)[:N, :C]
    return y2d.reshape(B, T, C)


def batchnorm1d_ref(x, gamma, beta, eps=EPS):
    # Pure-JAX reference mirroring PyTorch BatchNorm1d (training mode, biased var).
    B, T, C = x.shape
    x2d = x.reshape(B * T, C).astype(jnp.float32)
    mean = jnp.mean(x2d, axis=0, keepdims=True)
    var = jnp.mean((x2d - mean) ** 2, axis=0, keepdims=True)
    y = (x2d - mean) / jnp.sqrt(var + eps) * gamma.reshape(1, C) + beta.reshape(1, C)
    return y.reshape(B, T, C).astype(x.dtype)


if __name__ == "__main__":
    key = jax.random.PRNGKey(0)
    k1, k2, k3, k4, k5, k6 = jax.random.split(key, 6)

    # Case 1: small ECAPA-TDNN-like input, C=32 -> lane-folding path (k=4).
    B, T, C = 2, 8, 32
    x = jax.random.normal(k1, (B, T, C), dtype=jnp.float32)
    gamma = 1.0 + 0.1 * jax.random.normal(k2, (C,), dtype=jnp.float32)
    beta = 0.1 * jax.random.normal(k3, (C,), dtype=jnp.float32)
    out = jax.block_until_ready(batchnorm1d(x, gamma, beta))
    ref = batchnorm1d_ref(x, gamma, beta)
    assert out.shape == (B, T, C)
    assert jnp.allclose(out, ref, atol=1e-4, rtol=1e-4), float(jnp.max(jnp.abs(out - ref)))

    # Case 2: channel-padding path (C=192 -> 256 lanes) with a multi-tile grid.
    B2, T2, C2 = 3, 50, 192
    x2 = jax.random.normal(k4, (B2, T2, C2), dtype=jnp.float32)
    g2 = 1.0 + 0.1 * jax.random.normal(k5, (C2,), dtype=jnp.float32)
    b2 = 0.1 * jax.random.normal(k6, (C2,), dtype=jnp.float32)
    out2 = jax.block_until_ready(batchnorm1d(x2, g2, b2, max_tile_rows=64))
    ref2 = batchnorm1d_ref(x2, g2, b2)
    assert out2.shape == (B2, T2, C2)
    assert jnp.allclose(out2, ref2, atol=1e-4, rtol=1e-4), float(jnp.max(jnp.abs(out2 - ref2)))

    print("KERNEL_OK")
</pallas_src>

<mosaic_0001>
module attributes {stable_mosaic.version = 11 : i64} {
  func.func @_bn_stats_kernel(%arg0: i32, %arg1: memref<8x128xf32, #tpu.memory_space<vmem>>, %arg2: memref<1x128xf32, #tpu.memory_space<vmem>>, %arg3: memref<1x128xf32, #tpu.memory_space<vmem>>) attributes {dimension_semantics = [#tpu.dimension_semantics<arbitrary>], iteration_bounds = array<i64: 1>, scalar_prefetch = 0 : i64, scratch_operands = 0 : i64, tpu.core_type = #tpu.core_type<tc>, window_params = [{transform_indices = @transform_0, window_bounds = array<i64: 8, 128>}, {pipeline_mode = #tpu.pipeline_mode<synchronous>, transform_indices = @transform_1, window_bounds = array<i64: 1, 128>}, {pipeline_mode = #tpu.pipeline_mode<synchronous>, transform_indices = @transform_2, window_bounds = array<i64: 1, 128>}]} {
    %c0_i32 = arith.constant 0 : i32
    %0 = arith.cmpi eq, %arg0, %c0_i32 : i32
    %1 = arith.extui %0 : i1 to i32
    %c0_i32_0 = arith.constant 0 : i32
    %2 = arith.cmpi ne, %1, %c0_i32_0 : i32
    scf.if %2 {
      %cst_11 = arith.constant 0.000000e+00 : f32
      %15 = vector.broadcast %cst_11 : f32 to vector<1x128xf32>
      %c0_12 = arith.constant 0 : index
      %c0_13 = arith.constant 0 : index
      %16 = vector.load %arg2[%c0_12, %c0_13] : memref<1x128xf32, #tpu.memory_space<vmem>>, vector<1x128xf32>
      tpu.vector_store %arg2[%c0_12, %c0_13], %15 {strides = array<i32>} : memref<1x128xf32, #tpu.memory_space<vmem>>, vector<1x128xf32>,
      %cst_14 = arith.constant 0.000000e+00 : f32
      %17 = vector.broadcast %cst_14 : f32 to vector<1x128xf32>
      %c0_15 = arith.constant 0 : index
      %c0_16 = arith.constant 0 : index
      %18 = vector.load %arg3[%c0_15, %c0_16] : memref<1x128xf32, #tpu.memory_space<vmem>>, vector<1x128xf32>
      tpu.vector_store %arg3[%c0_15, %c0_16], %17 {strides = array<i32>} : memref<1x128xf32, #tpu.memory_space<vmem>>, vector<1x128xf32>,
    } else {
    }
    %c0 = arith.constant 0 : index
    %c0_1 = arith.constant 0 : index
    %3 = vector.load %arg1[%c0, %c0_1] : memref<8x128xf32, #tpu.memory_space<vmem>>, vector<8x128xf32>
    %c0_2 = arith.constant 0 : index
    %c0_3 = arith.constant 0 : index
    %4 = vector.load %arg2[%c0_2, %c0_3] : memref<1x128xf32, #tpu.memory_space<vmem>>, vector<1x128xf32>
    %cst = arith.constant dense<0.000000e+00> : vector<128xf32>
    %5 = vector.multi_reduction <add>, %3, %cst [0] : vector<8x128xf32> to vector<128xf32>
    %6 = vector.shape_cast %5 : vector<128xf32> to vector<1x128xf32>
    %7 = arith.addf %4, %6 : vector<1x128xf32>
    %c0_4 = arith.constant 0 : index
    %c0_5 = arith.constant 0 : index
    %8 = vector.load %arg2[%c0_4, %c0_5] : memref<1x128xf32, #tpu.memory_space<vmem>>, vector<1x128xf32>
    tpu.vector_store %arg2[%c0_4, %c0_5], %7 {strides = array<i32>} : memref<1x128xf32, #tpu.memory_space<vmem>>, vector<1x128xf32>,
    %c0_6 = arith.constant 0 : index
    %c0_7 = arith.constant 0 : index
    %9 = vector.load %arg3[%c0_6, %c0_7] : memref<1x128xf32, #tpu.memory_space<vmem>>, vector<1x128xf32>
    %10 = arith.mulf %3, %3 : vector<8x128xf32>
    %cst_8 = arith.constant dense<0.000000e+00> : vector<128xf32>
    %11 = vector.multi_reduction <add>, %10, %cst_8 [0] : vector<8x128xf32> to vector<128xf32>
    %12 = vector.shape_cast %11 : vector<128xf32> to vector<1x128xf32>
    %13 = arith.addf %9, %12 : vector<1x128xf32>
    %c0_9 = arith.constant 0 : index
    %c0_10 = arith.constant 0 : index
    %14 = vector.load %arg3[%c0_9, %c0_10] : memref<1x128xf32, #tpu.memory_space<vmem>>, vector<1x128xf32>
    tpu.vector_store %arg3[%c0_9, %c0_10], %13 {strides = array<i32>} : memref<1x128xf32, #tpu.memory_space<vmem>>, vector<1x128xf32>,
    return
  }
  func.func @transform_0(%arg0: i32) -> (i32, i32) {
    %c0_i32 = arith.constant 0 : i32
    %c0_i32_0 = arith.constant 0 : i32
    return %arg0, %c0_i32 : i32, i32
  }
  func.func @transform_1(%arg0: i32) -> (i32, i32) {
    %c0_i32 = arith.constant 0 : i32
    %c0_i32_0 = arith.constant 0 : i32
    %c0_i32_1 = arith.constant 0 : i32
    return %c0_i32, %c0_i32_0 : i32, i32
  }
  func.func @transform_2(%arg0: i32) -> (i32, i32) {
    %c0_i32 = arith.constant 0 : i32
    %c0_i32_0 = arith.constant 0 : i32
    %c0_i32_1 = arith.constant 0 : i32
    return %c0_i32, %c0_i32_0 : i32, i32
  }
}

</mosaic_0001>

<bundles_post_ra>
// kernel: tpu_custom_call.1
= control target key start
LH: loop header
LB: loop body
LE: loop exit
PB: predicated region body
PF: predicated region fallthrough
CT: control target
= control target key end

     0   :  { %8 = vsyncpa [#allocation3], 0  ;;  %s177_s0 = inlined_call_operand.hbm [shape: f32[8,128], index: 0, kind: input, shape index: {}]   ;;  %s178_s1 = inlined_call_operand.hbm [shape: f32[1,128], index: 1, kind: output, shape index: {0}]   ;;  %s179_s2 = inlined_call_operand.hbm [shape: f32[1,128], index: 2, kind: output, shape index: {1}]  }
   0x1   :  { %9 = vsyncpa [#allocation4], 0 }
   0x2   :  { %10 = vsyncpa [#allocation7], 0  ;;  %s149_s9 = smov [#allocation2]  }
   0x3   :  { %s17_s10 = sshll.u32 %s149_s9, 4  ;;  %s18_s10 = int_to_ptr.vmem [resolvable:$true] %s17_s10 }
   0x4   :  { %s91_s11 = scalar_lea.vmem %s18_s10, 128  ;;  %p96_p1 = scmp.lt.s32.totalorder %s18_s10, %s18_s10 }
   0x5   :  { %p92_p0 = scmp.ne.s32.totalorder %s18_s10, %s91_s11  ;;  %p97_p2 = scmp.lt.s32.totalorder %s91_s11, %s91_s11 }
   0x7   :  { %p98_p3 = por %p97_p2, %p96_p1 }
   0x9   :  { %p99_p4 = pnand %p98_p3, %p92_p0 }
   0xb   :  { %102 = shalt.err (!%p99_p4)
}
   0xc   :  { %20 = dma.hbm_to_vmem [thread:$0]  %s177_s0, 128, %s18_s10, [#allocation3]  }
   0xd   :  { %143 = dma.done.wait [#allocation3], 128  }
   0xe   :  { %144 = vsyncadd [#allocation3], 4294967168  ;;  %v150_v0 = vmov 0.0   ;;  %v30_v1 = vld [vmem:[#allocation2] sm:$0xff]  ;;  %s151_s14 = smov [#allocation5]   ;;  %s152_s0 = smov [#allocation6]  }
   0xf   :  { %28 = vst [vmem:[#allocation5] sm:$0x1] %v150_v0  ;;  %29 = vst [vmem:[#allocation6] sm:$0x1] %v150_v0  ;;  %v32_v2 = vrot.slane %v30_v1, 4  ;;  %v41_v3 = vmul.f32 %v30_v1, %v30_v1  ;;  %s56_s15 = sshll.u32 %s151_s14, 4  ;;  %s57_s15 = int_to_ptr.vmem [resolvable:$true] %s56_s15 }
  0x10   :  { %s66_s16 = sshll.u32 %s152_s0, 4  ;;  %s103_s17 = scalar_lea.vmem %s57_s15, 16  ;;  %s67_s16 = int_to_ptr.vmem [resolvable:$true] %s66_s16 }
  0x11   :  { %v33_v4 = vadd.f32 %v32_v2, %v30_v1  ;;  %v42_v5 = vrot.slane %v41_v3, 4  ;;  %p104_p5 = scmp.ne.s32.totalorder %s57_s15, %s103_s17  ;;  %s107_s18 = scalar_lea.vmem %s57_s15, 32 }
  0x12   :  { %p108_p6 = scmp.lt.s32.totalorder %s57_s15, %s57_s15  ;;  %p109_p7 = scmp.lt.s32.totalorder %s107_s18, %s103_s17 }
  0x13   :  { %v34_v6 = vrot.slane %v33_v4, 2  ;;  %v43_v7 = vadd.f32 %v42_v5, %v41_v3 }
  0x14   :  { %p110_p8 = por %p109_p7, %p108_p6 }
  0x15   :  { %v35_v8 = vadd.f32 %v34_v6, %v33_v4  ;;  %v44_v9 = vrot.slane %v43_v7, 2 }
  0x16   :  { %v31_v12 = vld [vmem:[#allocation5] sm:$0x1]  ;;  %v40_v15 = vld [vmem:[#allocation6] sm:$0x1]  ;;  %p111_p9 = pnand %p110_p8, %p104_p5 }
  0x17   :  { %v36_v10 = vrot.slane %v35_v8, 1  ;;  %v45_v11 = vadd.f32 %v44_v9, %v43_v7 }
  0x19   :  { %v37_v13 = vadd.f32 %v36_v10, %v35_v8  ;;  %v46_v14 = vrot.slane %v45_v11, 1 }
  0x1b   :  { %v38_v16 = vadd.f32 %v37_v13, %v31_v12  ;;  %v47_v17 = vadd.f32 %v46_v14, %v45_v11 }
  0x1d   :  { %39 = vst [vmem:[#allocation5] sm:$0x1] %v38_v16  ;;  %v48_v18 = vadd.f32 %v47_v17, %v40_v15 }
  0x1e   :  { %114 = shalt.err (!%p111_p9)
}
  0x1f   :  { %59 = dma.vmem_to_hbm [thread:$0]  %s57_s15, 16, %s178_s1, [#allocation4]   ;;  %49 = vst [vmem:[#allocation6] sm:$0x1] %v48_v18 }
  0x20   :  { %s123_s21 = scalar_lea.vmem %s67_s16, 16  ;;  %s127_s22 = scalar_lea.vmem %s67_s16, 32 }
  0x21   :  { %p124_p10 = scmp.ne.s32.totalorder %s67_s16, %s123_s21  ;;  %p128_p11 = scmp.lt.s32.totalorder %s67_s16, %s67_s16 }
  0x22   :  { %p129_p12 = scmp.lt.s32.totalorder %s127_s22, %s123_s21 }
  0x24   :  { %p130_p13 = por %p129_p12, %p128_p11 }
  0x26   :  { %p131_p0 = pnand %p130_p13, %p124_p10 }
  0x28   :  { %134 = shalt.err (!%p131_p0)
}
  0x29   :  { %69 = dma.vmem_to_hbm [thread:$0]  %s67_s16, 16, %s179_s2, [#allocation7]  }
  0x2a   :  { %145 = dma.done.wait [#allocation4], 16  }
  0x2b   :  { %146 = vsyncadd [#allocation4], 4294967280 }
  0x2c   :  { %147 = dma.done.wait [#allocation7], 16  }
  0x2d   :  { %148 = vsyncadd [#allocation7], 4294967280 }
  0x2e   :  { %76 = vsyncpa [#allocation3], 1 }
  0x2f   :  { %77 = vsyncpa [#allocation4], 1 }
  0x30   :  { %78 = vsyncpa [#allocation7], 1 }

</bundles_post_ra>
